<compile_context>
chip_gen: v7x
topology: tpu7x:2x2x1
jax: 0.10.0
libtpu: 0.0.40
codegen_flags: <defaults>
</compile_context>

<pallas_src>
import jax
import jax.numpy as jnp
from jax.experimental import pallas as pl
from jax.experimental.pallas import tpu as pltpu

_LANE = 128
_SUB = 8


def _round_up(x, m):
    return (x + m - 1) // m * m


def _attention_kernel(x_ref, w1t_ref, b1_ref, w2_ref, b2_ref, o_ref):
    # x_ref   : (TB, S, Dp)  VMEM f32  -- TB batch elements per grid step
    # w1t_ref : (Dp, Hp)     VMEM bf16 -- linear1 weight, transposed, padded
    # b1_ref  : (1, Hp)      VMEM f32  -- linear1 bias, zero-padded
    # w2_ref  : (1, Hp)      VMEM f32  -- linear2 weight row, zero-padded
    # b2_ref  : (1,)         SMEM f32  -- linear2 bias (scalar)
    # o_ref   : (TB, Dp)     VMEM f32  -- lane-dense output slab
    TB, S, Dp = x_ref.shape
    Hp = w1t_ref.shape[1]

    x = x_ref[...]                                     # (TB, S, Dp) f32
    x2 = x.reshape(TB * S, Dp)                         # fuse batch into MXU M

    # linear1 + tanh: one bf16 MXU matmul (f32 accumulation) for the block
    m = jnp.tanh(
        jnp.dot(
            x2.astype(jnp.bfloat16),
            w1t_ref[...],
            preferred_element_type=jnp.float32,
        )
        + b1_ref[...]
    )                                                  # (TB*S, Hp) f32

    # linear2 (N=1) as VPU multiply + XLU lane reduction -> dense (TB, S)
    m3 = m.reshape(TB, S, Hp)
    logits = jnp.sum(m3 * w2_ref[...], axis=-1) + b2_ref[0]     # (TB, S)

    # softmax over the sequence axis (PyTorch dim=1), dense 2-D layout
    logits = logits - jnp.max(logits, axis=-1, keepdims=True)
    e = jnp.exp(logits)
    score = e * pl.reciprocal(jnp.sum(e, axis=-1, keepdims=True), approx=True)

    # weighted sum of the inputs over the sequence axis
    o_ref[...] = jnp.sum(score[:, :, None] * x, axis=1)         # (TB, Dp)


def attention_forward(x, w1, b1, w2, b2):
    """x: (B, S, D) float32.  w1: (H, D), b1: (H,), w2: (1, H), b2: (1,)."""
    B, S, D = x.shape
    H = w1.shape[0]

    # pad feature dims to lane width (128): lane-dense matmul + stores
    Dp = _round_up(D, _LANE)
    Hp = _round_up(H, _LANE)

    # batch block: target ~2048 MXU rows per grid step, capped by a VMEM
    # budget (x f32 double-buffered + bf16 copy + m/logit intermediates +
    # double-buffered output slab), TB a multiple of 8 sublanes
    rows_target = 2048
    tb_target = max(_SUB, _round_up(pl.cdiv(rows_target, S), _SUB))
    vmem_budget = 24 * 1024 * 1024
    bytes_per_tb_row = S * (2 * Dp * 4 + Dp * 2 + Hp * 4 + Hp * 2) + 2 * Dp * 4
    tb_vmem_cap = max(_SUB, (vmem_budget // bytes_per_tb_row) // _SUB * _SUB)
    TB = min(tb_target, tb_vmem_cap)

    B8 = _round_up(B, _SUB)
    if B8 <= TB:
        # small batch: keep >=2 grid steps when possible so both v7x
        # TensorCores get work (the grid axis is "parallel")
        TB = _round_up(pl.cdiv(B, 2), _SUB) if B > _SUB else B8
    B_pad = _round_up(B, TB)

    xp = jnp.zeros((B_pad, S, Dp), jnp.float32).at[:B, :, :D].set(x)
    w1t = (
        jnp.zeros((Dp, Hp), jnp.float32)
        .at[:D, :H]
        .set(jnp.transpose(w1))
        .astype(jnp.bfloat16)
    )
    b1r = jnp.zeros((1, Hp), jnp.float32).at[0, :H].set(b1)
    w2r = jnp.zeros((1, Hp), jnp.float32).at[0, :H].set(w2[0])
    b2r = b2.reshape(1).astype(jnp.float32)

    out = pl.pallas_call(
        _attention_kernel,
        out_shape=jax.ShapeDtypeStruct((B_pad, Dp), jnp.float32),
        grid_spec=pltpu.PrefetchScalarGridSpec(
            num_scalar_prefetch=0,
            grid=(B_pad // TB,),
            in_specs=[
                pl.BlockSpec((TB, S, Dp), lambda b: (b, 0, 0)),
                pl.BlockSpec((Dp, Hp), lambda b: (0, 0)),
                pl.BlockSpec((1, Hp), lambda b: (0, 0)),
                pl.BlockSpec((1, Hp), lambda b: (0, 0)),
                pl.BlockSpec(memory_space=pltpu.MemorySpace.SMEM),
            ],
            out_specs=pl.BlockSpec((TB, Dp), lambda b: (b, 0)),
        ),
        compiler_params=pltpu.CompilerParams(
            dimension_semantics=("parallel",),
            vmem_limit_bytes=48 * 1024 * 1024,
        ),
    )(xp, w1t, b1r, w2r, b2r)

    return out[:B, :D]


def _reference(x, w1, b1, w2, b2):
    m = jnp.tanh(jnp.einsum("bsd,hd->bsh", x, w1) + b1)
    logits = jnp.einsum("bsh,oh->bso", m, w2) + b2           # (B, S, 1)
    score = jax.nn.softmax(logits, axis=1)
    return jnp.sum(score * x, axis=1)


def _init_params(key, input_size, hidden_size):
    k1, k2, k3, k4 = jax.random.split(key, 4)
    # xavier_normal_ for weights: std = sqrt(2 / (fan_in + fan_out))
    std1 = (2.0 / (input_size + hidden_size)) ** 0.5
    std2 = (2.0 / (hidden_size + 1)) ** 0.5
    w1 = std1 * jax.random.normal(k1, (hidden_size, input_size), jnp.float32)
    w2 = std2 * jax.random.normal(k2, (1, hidden_size), jnp.float32)
    # PyTorch Linear default bias init: U(-1/sqrt(fan_in), 1/sqrt(fan_in))
    bound1 = 1.0 / (input_size ** 0.5)
    bound2 = 1.0 / (hidden_size ** 0.5)
    b1 = jax.random.uniform(k3, (hidden_size,), jnp.float32, -bound1, bound1)
    b2 = jax.random.uniform(k4, (1,), jnp.float32, -bound2, bound2)
    return w1, b1, w2, b2


if __name__ == "__main__":
    B, S, D, H = 2, 8, 32, 32   # batch, seq, input_size, hidden_size

    key = jax.random.PRNGKey(0)
    kx, kp = jax.random.split(key)
    x = jax.random.normal(kx, (B, S, D), jnp.float32)
    w1, b1, w2, b2 = _init_params(kp, D, H)

    out = attention_forward(x, w1, b1, w2, b2)
    out = jax.block_until_ready(out)

    ref = _reference(x, w1, b1, w2, b2)
    assert out.shape == (B, D)
    # tolerance accounts for bf16 MXU inputs (f32 accumulation) and the EUP
    # approximate reciprocal in the softmax
    err = jnp.max(jnp.abs(out - ref))
    assert jnp.allclose(out, ref, atol=3e-2, rtol=3e-2), f"max err {err}"
    print("KERNEL_OK")
</pallas_src>

<mosaic_0001>
module attributes {stable_mosaic.version = 11 : i64} {
  func.func @_attention_kernel(%arg0: i32, %arg1: memref<8x8x128xf32, #tpu.memory_space<vmem>>, %arg2: memref<128x128xbf16, #tpu.memory_space<vmem>>, %arg3: memref<1x128xf32, #tpu.memory_space<vmem>>, %arg4: memref<1x128xf32, #tpu.memory_space<vmem>>, %arg5: memref<1xf32, #tpu.memory_space<smem>>, %arg6: memref<8x128xf32, #tpu.memory_space<vmem>>) attributes {dimension_semantics = [#tpu.dimension_semantics<parallel>], iteration_bounds = array<i64: 1>, scalar_prefetch = 0 : i64, scratch_operands = 0 : i64, tpu.core_type = #tpu.core_type<tc>, window_params = [{transform_indices = @transform_0, window_bounds = array<i64: 8, 8, 128>}, {pipeline_mode = #tpu.pipeline_mode<synchronous>, transform_indices = @transform_1, window_bounds = array<i64: 128, 128>}, {pipeline_mode = #tpu.pipeline_mode<synchronous>, transform_indices = @transform_2, window_bounds = array<i64: 1, 128>}, {pipeline_mode = #tpu.pipeline_mode<synchronous>, transform_indices = @transform_3, window_bounds = array<i64: 1, 128>}, {transform_indices = @transform_4, window_bounds = array<i64: 1>}, {transform_indices = @transform_5, window_bounds = array<i64: 8, 128>}]} {
    %c0 = arith.constant 0 : index
    %c0_0 = arith.constant 0 : index
    %c0_1 = arith.constant 0 : index
    %0 = vector.load %arg1[%c0, %c0_0, %c0_1] : memref<8x8x128xf32, #tpu.memory_space<vmem>>, vector<8x8x128xf32>
    %1 = vector.shape_cast %0 : vector<8x8x128xf32> to vector<64x128xf32>
    %2 = arith.truncf %1 : vector<64x128xf32> to vector<64x128xbf16>
    %c0_2 = arith.constant 0 : index
    %c0_3 = arith.constant 0 : index
    %3 = vector.load %arg2[%c0_2, %c0_3] : memref<128x128xbf16, #tpu.memory_space<vmem>>, vector<128x128xbf16>
    %cst = arith.constant dense<0.000000e+00> : vector<64x128xf32>
    %4 = tpu.matmul %2, %3, %cst {dimension_numbers = #tpu.dot_dimension_numbers<[1], [0], [0], [1], [0, 0, 1, 1], [], []>} : vector<64x128xbf16>, vector<128x128xbf16>, vector<64x128xf32> -> vector<64x128xf32>
    %c0_4 = arith.constant 0 : index
    %c0_5 = arith.constant 0 : index
    %5 = vector.load %arg3[%c0_4, %c0_5] : memref<1x128xf32, #tpu.memory_space<vmem>>, vector<1x128xf32>
    %6 = vector.broadcast %5 : vector<1x128xf32> to vector<64x128xf32>
    %7 = arith.addf %4, %6 : vector<64x128xf32>
    %8 = math.tanh %7 : vector<64x128xf32>
    %9 = vector.shape_cast %8 : vector<64x128xf32> to vector<8x8x128xf32>
    %c0_6 = arith.constant 0 : index
    %c0_7 = arith.constant 0 : index
    %10 = vector.load %arg4[%c0_6, %c0_7] : memref<1x128xf32, #tpu.memory_space<vmem>>, vector<1x128xf32>
    %11 = vector.shape_cast %10 : vector<1x128xf32> to vector<1x1x128xf32>
    %12 = vector.broadcast %11 : vector<1x1x128xf32> to vector<8x8x128xf32>
    %13 = arith.mulf %9, %12 : vector<8x8x128xf32>
    %cst_8 = arith.constant dense<0.000000e+00> : vector<8x8xf32>
    %14 = vector.multi_reduction <add>, %13, %cst_8 [2] : vector<8x8x128xf32> to vector<8x8xf32>
    %c0_9 = arith.constant 0 : index
    %15 = memref.load %arg5[%c0_9] : memref<1xf32, #tpu.memory_space<smem>>
    %16 = vector.broadcast %15 : f32 to vector<8x8xf32>
    %17 = arith.addf %14, %16 : vector<8x8xf32>
    %cst_10 = arith.constant dense<0xFF800000> : vector<8xf32>
    %18 = vector.multi_reduction <maximumf>, %17, %cst_10 [1] : vector<8x8xf32> to vector<8xf32>
    %19 = vector.shape_cast %18 : vector<8xf32> to vector<8x1xf32>
    %20 = vector.broadcast %19 : vector<8x1xf32> to vector<8x8xf32>
    %21 = arith.subf %17, %20 : vector<8x8xf32>
    %22 = math.exp %21 : vector<8x8xf32>
    %cst_11 = arith.constant dense<0.000000e+00> : vector<8xf32>
    %23 = vector.multi_reduction <add>, %22, %cst_11 [1] : vector<8x8xf32> to vector<8xf32>
    %24 = vector.shape_cast %23 : vector<8xf32> to vector<8x1xf32>
    %25 = tpu.reciprocal %24 {approx = true} : vector<8x1xf32> -> vector<8x1xf32>
    %26 = vector.broadcast %25 : vector<8x1xf32> to vector<8x8xf32>
    %27 = arith.mulf %22, %26 : vector<8x8xf32>
    %28 = vector.shape_cast %27 : vector<8x8xf32> to vector<8x8x1xf32>
    %29 = vector.broadcast %28 : vector<8x8x1xf32> to vector<8x8x128xf32>
    %30 = arith.mulf %29, %0 : vector<8x8x128xf32>
    %cst_12 = arith.constant dense<0.000000e+00> : vector<8x128xf32>
    %31 = vector.multi_reduction <add>, %30, %cst_12 [1] : vector<8x8x128xf32> to vector<8x128xf32>
    %c0_13 = arith.constant 0 : index
    %c0_14 = arith.constant 0 : index
    %32 = vector.load %arg6[%c0_13, %c0_14] : memref<8x128xf32, #tpu.memory_space<vmem>>, vector<8x128xf32>
    tpu.vector_store %arg6[%c0_13, %c0_14], %31 {strides = array<i32>} : memref<8x128xf32, #tpu.memory_space<vmem>>, vector<8x128xf32>,
    return
  }
  func.func @transform_0(%arg0: i32) -> (i32, i32, i32) {
    %c0_i32 = arith.constant 0 : i32
    %c0_i32_0 = arith.constant 0 : i32
    %c0_i32_1 = arith.constant 0 : i32
    return %arg0, %c0_i32, %c0_i32_0 : i32, i32, i32
  }
  func.func @transform_1(%arg0: i32) -> (i32, i32) {
    %c0_i32 = arith.constant 0 : i32
    %c0_i32_0 = arith.constant 0 : i32
    %c0_i32_1 = arith.constant 0 : i32
    return %c0_i32, %c0_i32_0 : i32, i32
  }
  func.func @transform_2(%arg0: i32) -> (i32, i32) {
    %c0_i32 = arith.constant 0 : i32
    %c0_i32_0 = arith.constant 0 : i32
    %c0_i32_1 = arith.constant 0 : i32
    return %c0_i32, %c0_i32_0 : i32, i32
  }
  func.func @transform_3(%arg0: i32) -> (i32, i32) {
    %c0_i32 = arith.constant 0 : i32
    %c0_i32_0 = arith.constant 0 : i32
    %c0_i32_1 = arith.constant 0 : i32
    return %c0_i32, %c0_i32_0 : i32, i32
  }
  func.func @transform_4(%arg0: i32) -> i32 {
    %c0_i32 = arith.constant 0 : i32
    %c0_i32_0 = arith.constant 0 : i32
    return %c0_i32 : i32
  }
  func.func @transform_5(%arg0: i32) -> (i32, i32) {
    %c0_i32 = arith.constant 0 : i32
    %c0_i32_0 = arith.constant 0 : i32
    return %arg0, %c0_i32 : i32, i32
  }
}

</mosaic_0001>

<bundles_post_ra>
// kernel: tpu_custom_call.1
= control target key start
LH: loop header
LB: loop body
LE: loop exit
PB: predicated region body
PF: predicated region fallthrough
CT: control target
= control target key end

     0   :  { %11 = vsyncpa [#allocation4], 0  ;;  %s1021_s0 = inlined_call_operand.hbm [shape: f32[8,8,128], index: 0, kind: input, shape index: {}]   ;;  %s1022_s1 = inlined_call_operand.hbm [shape: bf16[128,128], index: 1, kind: input, shape index: {}]   ;;  %s1023_s2 = inlined_call_operand.vmem [shape: f32[1,128], index: 2, kind: input, shape index: {}]   ;;  %s1024_s3 = inlined_call_operand.vmem [shape: f32[1,128], index: 3, kind: input, shape index: {}]   ;;  %s1025_s4 = inlined_call_operand.<no memory space> [shape: f32[1], index: 4, kind: input, shape index: {}]   ;;  %s1026_s5 = inlined_call_operand.hbm [shape: f32[8,128], index: 5, kind: output, shape index: {}]  }
   0x1   :  { %12 = vsyncpa [#allocation7], 0 }
   0x2   :  { %13 = vsyncpa [#allocation5], 0  ;;  %s814_s18 = smov [#allocation3]   ;;  %s742_s22 = scalar_lea.hbm %s1021_s0, 1024 }
   0x3   :  { %s19_s19 = sshll.u32 %s814_s18, 4  ;;  %p743_p0 = scmp.ne.s32.totalorder %s1021_s0, %s742_s22  ;;  %s20_s19 = int_to_ptr.vmem [resolvable:$true] %s19_s19 }
   0x4   :  { %p746_p1 = scmp.lt.u32.totalorder %s742_s22, %s1021_s0 }
   0x6   :  { %p748_p2 = pnand %p746_p1, %p743_p0 }
   0x8   :  { %751 = shalt.err (!%p748_p2)
}
   0x9   :  { %s752_s27 = scalar_lea.vmem %s20_s19, 1024  ;;  %p757_p4 = scmp.lt.s32.totalorder %s20_s19, %s20_s19 }
   0xa   :  { %p753_p3 = scmp.ne.s32.totalorder %s20_s19, %s752_s27  ;;  %p758_p5 = scmp.lt.s32.totalorder %s752_s27, %s752_s27 }
   0xc   :  { %p759_p6 = por %p758_p5, %p757_p4 }
   0xe   :  { %p760_p7 = pnand %p759_p6, %p753_p3 }
  0x10   :  { %763 = shalt.err (!%p760_p7)
}
  0x11   :  { %s815_s28 = smov 128   ;;  %s816_s29 = smov 8  }
  0x12   :  { %25 = dma.hbm_to_vmem [thread:$0]  %s1021_s0, 1024, %s20_s19, [#allocation4], %s815_s28, %s815_s28, %s816_s29  }
  0x13   :  { %s817_s7 = smov [#allocation6]   ;;  %s764_s11 = scalar_lea.hbm %s1022_s1, 1024 }
  0x14   :  { %s31_s8 = sshll.u32 %s817_s7, 4  ;;  %p765_p8 = scmp.ne.s32.totalorder %s1022_s1, %s764_s11  ;;  %s32_s8 = int_to_ptr.vmem [resolvable:$true] %s31_s8 }
  0x15   :  { %p768_p9 = scmp.lt.u32.totalorder %s764_s11, %s1022_s1 }
  0x17   :  { %p770_p10 = pnand %p768_p9, %p765_p8 }
  0x19   :  { %773 = shalt.err (!%p770_p10)
}
  0x1a   :  { %s774_s16 = scalar_lea.vmem %s32_s8, 1024  ;;  %p779_p12 = scmp.lt.s32.totalorder %s32_s8, %s32_s8 }
  0x1b   :  { %p775_p11 = scmp.ne.s32.totalorder %s32_s8, %s774_s16  ;;  %p780_p13 = scmp.lt.s32.totalorder %s774_s16, %s774_s16 }
  0x1d   :  { %p781_p0 = por %p780_p13, %p779_p12 }
  0x1f   :  { %p782_p1 = pnand %p781_p0, %p775_p11 }
  0x21   :  { %785 = shalt.err (!%p782_p1)
}
  0x22   :  { %s818_s0 = smov 64   ;;  %s819_s17 = smov 4  }
  0x23   :  { %37 = dma.hbm_to_vmem [thread:$0]  %s1022_s1, 1024, %s32_s8, [#allocation7], %s818_s0, %s818_s0, %s819_s17  }
  0x24   :  { %808 = dma.done.wait [#allocation4], 1024  }
  0x25   :  { %809 = vsyncadd [#allocation4], 4294966272 }
  0x26   :  { %810 = dma.done.wait [#allocation7], 1024  }
  0x27   :  { %811 = vsyncadd [#allocation7], 4294966272  ;;  %v700_v0 = vld [vmem:[#allocation6] sm:$0xff]   ;;  %v701_v1 = vld [vmem:[#allocation6 + $0x8] sm:$0xff]   ;;  %v256_v54 = vlaneseq  ;;  %v239_v58 = vstv %s1025_s4  ;;  %vm290_vm0 = vcmask 1041409   ;;  %vm292_vm1 = vcmask 1042434  }
  0x28   :  { %650 = vmatprep.subr.bf16.mxu0 %v700_v0  ;;  %674 = vmatprep.subr.bf16.mxu1 %v700_v0  ;;  %v702_v2 = vld [vmem:[#allocation6 + $0x10] sm:$0xff]   ;;  %v703_v3 = vld [vmem:[#allocation6 + $0x18] sm:$0xff]   ;;  %v876_v4 = vld [vmem:[#allocation3] sm:$0xff]  ;;  %vm294_vm2 = vcmask 1043459   ;;  %vm296_vm3 = vcmask 1044484   ;;  %vm298_vm4 = vcmask 1045509  }
  0x29   :  { %651 = vmatpush3.bf16.msra.mxu0 %v700_v0  ;;  %682 = vmatpush3.bf16.msra.mxu1 %v700_v0  ;;  %v878_v5 = vld [vmem:[#allocation3 + $0x8] sm:$0xff]  ;;  %v882_v7 = vld [vmem:[#allocation3 + $0x20] sm:$0xff]  ;;  %v706_v12 = vld [vmem:[#allocation6 + $0x30] sm:$0xff]   ;;  %v257_v55 = vand.u32 127, %v256_v54  ;;  %v906_v56 = vshrl.u32 %v256_v54, 7  ;;  %vm300_vm5 = vcmask 1046534  }
  0x2a   :  { %652 = vmatprep.subr.bf16.mxu0 %v701_v1  ;;  %675 = vmatprep.subr.bf16.mxu1 %v701_v1  ;;  %v59_v6 = vpack.c.bf16 %v878_v5, %v876_v4  ;;  %v884_v8 = vld [vmem:[#allocation3 + $0x28] sm:$0xff]  ;;  %v704_v10 = vld [vmem:[#allocation6 + $0x20] sm:$0xff]   ;;  %v707_v13 = vld [vmem:[#allocation6 + $0x38] sm:$0xff]   ;;  %vm302_vm6 = vcmask 1047559   ;;  %vm305_vm7 = vcmask 64512   ;;  %s821_s4 = smov [#allocation8]  }
  0x2b   :  { %v61_v9 = vpack.c.bf16 %v884_v8, %v882_v7  ;;  %v705_v11 = vld [vmem:[#allocation6 + $0x28] sm:$0xff]   ;;  %v888_v14 = vld [vmem:[#allocation3 + $0x10] sm:$0xff]  ;;  %v890_v15 = vld [vmem:[#allocation3 + $0x18] sm:$0xff]  ;;  %v912_v60 = vsub.s32 %v257_v55, %v906_v56  ;;  %v336_v55 = vsub.s32 6, %v906_v56  ;;  %s618_s23 = sshll.u32 %s821_s4, 4  ;;  %s619_s23 = int_to_ptr.vmem [resolvable:$true] %s618_s23 }
  0x2c   :  { %666 = vmatprep.mubr.bf16.mxu0 %v59_v6  ;;  %v892_v16 = vld [vmem:[#allocation3 + $0x30] sm:$0xff]  ;;  %v894_v17 = vld [vmem:[#allocation3 + $0x38] sm:$0xff]  ;;  %v60_v18 = vpack.c.bf16 %v890_v15, %v888_v14  ;;  %v628_v20 = vld [vmem:[%s1023_s2] ss:$0 sm:$0xff]  ;;  %s786_s24 = scalar_lea.vmem %s619_s23, 128  ;;  %p791_p3 = scmp.lt.s32.totalorder %s619_s23, %s619_s23 }
  0x2d   :  { %653 = vmatpush3.bf16.msra.mxu0 %v701_v1  ;;  %683 = vmatpush3.bf16.msra.mxu1 %v701_v1  ;;  %v62_v19 = vpack.c.bf16 %v894_v17, %v892_v16  ;;  %v637_v37 = vld [vmem:[%s1024_s3] ss:$0 sm:$0xff]  ;;  %p787_p2 = scmp.ne.s32.totalorder %s619_s23, %s786_s24  ;;  %p792_p4 = scmp.lt.s32.totalorder %s786_s24, %s786_s24 }
  0x2e   :  { %654 = vmatprep.subr.bf16.mxu0 %v702_v2  ;;  %676 = vmatprep.subr.bf16.mxu1 %v702_v2 }
  0x2f   :  { %670 = vmatprep.mubr.bf16.mxu1 %v61_v9  ;;  %p793_p5 = por %p792_p4, %p791_p3 }
  0x31   :  { %655 = vmatpush3.bf16.msra.mxu0 %v702_v2  ;;  %684 = vmatpush3.bf16.msra.mxu1 %v702_v2  ;;  %p794_p6 = pnand %p793_p5, %p787_p2 }
  0x32   :  { %656 = vmatprep.subr.bf16.mxu0 %v703_v3  ;;  %677 = vmatprep.subr.bf16.mxu1 %v703_v3 }
  0x35   :  { %657 = vmatpush3.bf16.msra.mxu0 %v703_v3  ;;  %685 = vmatpush3.bf16.msra.mxu1 %v703_v3 }
  0x36   :  { %658 = vmatprep.subr.bf16.mxu0 %v704_v10  ;;  %678 = vmatprep.subr.bf16.mxu1 %v704_v10 }
  0x39   :  { %659 = vmatpush3.bf16.msra.mxu0 %v704_v10  ;;  %686 = vmatpush3.bf16.msra.mxu1 %v704_v10 }
  0x3a   :  { %660 = vmatprep.subr.bf16.mxu0 %v705_v11  ;;  %679 = vmatprep.subr.bf16.mxu1 %v705_v11 }
  0x3d   :  { %661 = vmatpush3.bf16.msra.mxu0 %v705_v11  ;;  %687 = vmatpush3.bf16.msra.mxu1 %v705_v11 }
  0x3e   :  { %662 = vmatprep.subr.bf16.mxu0 %v706_v12  ;;  %680 = vmatprep.subr.bf16.mxu1 %v706_v12 }
  0x41   :  { %663 = vmatpush3.bf16.msra.mxu0 %v706_v12  ;;  %688 = vmatpush3.bf16.msra.mxu1 %v706_v12 }
  0x42   :  { %664 = vmatprep.subr.bf16.mxu0 %v707_v13  ;;  %681 = vmatprep.subr.bf16.mxu1 %v707_v13 }
  0x45   :  { %665 = vmatpush3.bf16.msra.mxu0 %v707_v13  ;;  %689 = vmatpush3.bf16.msra.mxu1 %v707_v13 }
  0x48   :  { %667 = vmatmul.mubr.bf16.vlgmr.msra.gmra.mrb[0].mxu0 %v60_v18  ;;  %671 = vmatmul.mubr.bf16.vlgmr.msra.gmra.mrb[0].mxu1 %v62_v19 }
 0x11b   :  { %v668_v21 = vpop.f32.mrb[0].mxu0  ;;  %v672_v22 = vpop.f32.mrb[0].mxu1 }
 0x11c   :  { %v177_v23 = vadd.f32 %v668_v21, %v628_v20  ;;  %v168_v24 = vpop.f32.mrb[1].mxu0  ;;  %v184_v25 = vpop.f32.mrb[1].mxu1  ;;  %v193_v36 = vadd.f32 %v672_v22, %v628_v20 }
 0x11d   :  { %v169_v26 = vadd.f32 %v628_v20, %v168_v24  ;;  %v669_v27 = vpop.f32.mrb[2].mxu0  ;;  %v673_v28 = vpop.f32.mrb[2].mxu1  ;;  %v185_v33 = vadd.f32 %v628_v20, %v184_v25 }
 0x11e   :  { %708 = vtanh.f32 %v177_v23  ;;  %v180_v29 = vadd.f32 %v669_v27, %v628_v20  ;;  %v171_v30 = vpop.f32.mrb[3].mxu0  ;;  %v187_v31 = vpop.f32.mrb[3].mxu1  ;;  %v196_v35 = vadd.f32 %v673_v28, %v628_v20 }
 0x11f   :  { %710 = vtanh.f32 %v169_v26  ;;  %v172_v32 = vadd.f32 %v628_v20, %v171_v30  ;;  %v188_v34 = vadd.f32 %v628_v20, %v187_v31 }
 0x120   :  { %712 = vtanh.f32 %v180_v29 }
 0x121   :  { %714 = vtanh.f32 %v172_v32 }
 0x122   :  { %716 = vtanh.f32 %v185_v33 }
 0x123   :  { %718 = vtanh.f32 %v188_v34 }
 0x124   :  { %720 = vtanh.f32 %v196_v35  ;;  %v820_v35 = vmov 0  }
 0x125   :  { %722 = vtanh.f32 %v193_v36  ;;  %699 = vset.pattern.permute.xlu0 %v820_v35  ;;  %698 = vset.pattern.permute.xlu1 %v820_v35  ;;  %v312_v36 = vsub.s32 0, %v906_v56 }
 0x128   :  { %v709_v38 = vpop.eup %708 }
 0x129   :  { %v711_v39 = vpop.eup %710  ;;  %v216_v40 = vmul.f32 %v709_v38, %v637_v37  ;;  %v320_v38 = vsub.s32 2, %v906_v56 }
 0x12a   :  { %v713_v41 = vpop.eup %712  ;;  %v214_v42 = vmul.f32 %v711_v39, %v637_v37  ;;  %v324_v39 = vsub.s32 3, %v906_v56 }
 0x12b   :  { %v715_v43 = vpop.eup %714  ;;  %226 = vadd.xlane.f32.xlu1 %v216_v40  ;;  %v217_v44 = vmul.f32 %v713_v41, %v637_v37 }
 0x12c   :  { %222 = vadd.xlane.f32.xlu0 %v214_v42  ;;  %v717_v45 = vpop.eup %716  ;;  %v215_v46 = vmul.f32 %v715_v43, %v637_v37 }
 0x12d   :  { %v719_v47 = vpop.eup %718  ;;  %v218_v50 = vmul.f32 %v717_v45, %v637_v37 }
 0x12e   :  { %v219_v48 = vmul.f32 %v719_v47, %v637_v37  ;;  %v721_v49 = vpop.eup %720 }
 0x12f   :  { %228 = vadd.xlane.f32.xlu1 %v217_v44  ;;  %v723_v51 = vpop.eup %722  ;;  %v221_v52 = vmul.f32 %v721_v49, %v637_v37  ;;  %v328_v44 = vsub.s32 4, %v906_v56 }
 0x130   :  { %224 = vadd.xlane.f32.xlu0 %v215_v46  ;;  %v220_v53 = vmul.f32 %v723_v51, %v637_v37  ;;  %v316_v37 = vsub.s32 1, %v906_v56  ;;  %v332_v51 = vsub.s32 5, %v906_v56 }
 0x133   :  { %232 = vadd.xlane.f32.xlu1 %v219_v48 }
 0x134   :  { %230 = vadd.xlane.f32.xlu0 %v218_v50 }
 0x137   :  { %236 = vadd.xlane.f32.xlu1 %v221_v52 }
 0x138   :  { %234 = vadd.xlane.f32.xlu0 %v220_v53 }
 0x1b8   :  { %v227_v57 = vpop.xlane.xlu1 %226 }
 0x1b9   :  { %v223_v59 = vpop.xlane.xlu0 %222  ;;  %v242_v63 = vadd.f32 %v239_v58, %v227_v57 }
 0x1ba   :  { %v240_v61 = vadd.f32 %v239_v58, %v223_v59 }
 0x1bb   :  { %v269_v10 = vrot.slane %v242_v63, %v912_v60 }
 0x1bc   :  { %v229_v62 = vpop.xlane.xlu1 %228  ;;  %v261_v3 = vrot.slane %v240_v61, %v912_v60 }
 0x1bd   :  { %v225_v0 = vpop.xlane.xlu0 %224  ;;  %v914_v1 = vadd.f32 %v239_v58, %v229_v62 }
 0x1be   :  { %v241_v2 = vadd.f32 %v239_v58, %v225_v0 }
 0x1bf   :  { %v273_v12 = vrot.slane %v914_v1, %v912_v60 }
 0x1c0   :  { %v265_v6 = vrot.slane %v241_v2, %v912_v60  ;;  %v233_v9 = vpop.xlane.xlu1 %232 }
 0x1c1   :  { %v231_v11 = vpop.xlane.xlu0 %230  ;;  %v245_v20 = vadd.f32 %v239_v58, %v233_v9 }
 0x1c2   :  { %v291_v13 = vsel %vm290_vm0, %v265_v6, %v261_v3  ;;  %v244_v18 = vadd.f32 %v239_v58, %v231_v11 }
 0x1c3   :  { %v293_v19 = vsel %vm292_vm1, %v269_v10, %v291_v13  ;;  %v281_v28 = vrot.slane %v245_v20, %v912_v60 }
 0x1c4   :  { %v295_v21 = vsel %vm294_vm2, %v273_v12, %v293_v19  ;;  %v277_v22 = vrot.slane %v244_v18, %v912_v60  ;;  %v237_v23 = vpop.xlane.xlu1 %236 }
 0x1c5   :  { %v925_v24 = vadd.f32 %v239_v58, %v237_v23  ;;  %v235_v25 = vpop.xlane.xlu0 %234 }
 0x1c6   :  { %v297_v26 = vsel %vm296_vm3, %v277_v22, %v295_v21  ;;  %v246_v27 = vadd.f32 %v239_v58, %v235_v25 }
 0x1c7   :  { %v289_v30 = vrot.slane %v925_v24, %v912_v60  ;;  %v299_v31 = vsel %vm298_vm4, %v281_v28, %v297_v26 }
 0x1c8   :  { %v285_v29 = vrot.slane %v246_v27, %v912_v60 }
 0x1ca   :  { %v301_v32 = vsel %vm300_vm5, %v285_v29, %v299_v31 }
 0x1cb   :  { %v303_v33 = vsel %vm302_vm6, %v289_v30, %v301_v32 }
 0x1cc   :  { %v306_v34 = vsel %vm305_vm7, %v303_v33, -inf }
 0x1cd   :  { %307 = vmax.xlane.f32.xlu0 %v306_v34 }
 0x25a   :  { %v308_v40 = vpop.xlane.xlu0 %307 }
 0x25b   :  { %v313_v41 = vrot.slane %v308_v40, %v312_v36  ;;  %v317_v42 = vrot.slane %v308_v40, %v316_v37  ;;  %v321_v43 = vrot.slane %v308_v40, %v320_v38  ;;  %v325_v45 = vrot.slane %v308_v40, %v324_v39 }
 0x25c   :  { %v329_v52 = vrot.slane %v308_v40, %v328_v44  ;;  %v333_v57 = vrot.slane %v308_v40, %v332_v51  ;;  %v337_v62 = vrot.slane %v308_v40, %v336_v55 }
 0x25d   :  { %v350_v46 = vsub.f32 %v240_v61, %v313_v41  ;;  %v351_v47 = vsub.f32 %v241_v2, %v317_v42  ;;  %v352_v48 = vsub.f32 %v242_v63, %v321_v43  ;;  %v353_v53 = vsub.f32 %v914_v1, %v325_v45 }
 0x25e   :  { %v354_v58 = vsub.f32 %v244_v18, %v329_v52  ;;  %v340_v61 = vsub.s32 7, %v906_v56  ;;  %v355_v63 = vsub.f32 %v245_v20, %v333_v57  ;;  %v356_v6 = vsub.f32 %v246_v27, %v337_v62 }
 0x25f   :  { %v358_v49 = vmul.f32 1.442695, %v350_v46  ;;  %v360_v50 = vmul.f32 1.442695, %v351_v47  ;;  %v362_v54 = vmul.f32 1.442695, %v352_v48 }
 0x260   :  { %v364_v59 = vmul.f32 1.442695, %v353_v53  ;;  %v366_v0 = vmul.f32 1.442695, %v354_v58  ;;  %v341_v3 = vrot.slane %v308_v40, %v340_v61  ;;  %v368_v9 = vmul.f32 1.442695, %v355_v63 }
 0x261   :  { %724 = vpow2.f32 %v358_v49  ;;  %v370_v12 = vmul.f32 1.442695, %v356_v6 }
 0x262   :  { %726 = vpow2.f32 %v360_v50  ;;  %v357_v11 = vsub.f32 %v925_v24, %v341_v3 }
 0x263   :  { %728 = vpow2.f32 %v362_v54 }
 0x264   :  { %730 = vpow2.f32 %v364_v59  ;;  %v372_v18 = vmul.f32 1.442695, %v357_v11 }
 0x265   :  { %732 = vpow2.f32 %v366_v0 }
 0x266   :  { %734 = vpow2.f32 %v368_v9 }
 0x267   :  { %736 = vpow2.f32 %v370_v12 }
 0x268   :  { %738 = vpow2.f32 %v372_v18 }
 0x26b   :  { %v725_v1 = vpop.eup %724 }
 0x26c   :  { %v727_v2 = vpop.eup %726  ;;  %383 = vperm.xlu1 %698, %v725_v1  }
 0x26d   :  { %386 = vperm.xlu0 %699, %v727_v2   ;;  %v729_v10 = vpop.eup %728 }
 0x26e   :  { %v731_v13 = vpop.eup %730 }
 0x26f   :  { %v733_v19 = vpop.eup %732 }
 0x270   :  { %389 = vperm.xlu1 %698, %v729_v10   ;;  %v735_v20 = vpop.eup %734 }
 0x271   :  { %v737_v21 = vpop.eup %736 }
 0x272   :  { %v739_v22 = vpop.eup %738 }
 0x274   :  { %392 = vperm.xlu1 %698, %v731_v13  }
 0x278   :  { %395 = vperm.xlu1 %698, %v733_v19  }
 0x27c   :  { %398 = vperm.xlu1 %698, %v735_v20  }
 0x280   :  { %401 = vperm.xlu1 %698, %v737_v21  }
 0x284   :  { %404 = vperm.xlu1 %698, %v739_v22  }
 0x2eb   :  { %v384_v23 = vpop.permute.xlu1 %383 }
 0x2ec   :  { %v387_v24 = vpop.permute.xlu0 %386  ;;  %v409_v30 = vrot.slane %v384_v23, %v912_v60 }
 0x2ed   :  { %v413_v29 = vrot.slane %v387_v24, %v912_v60 }
 0x2ef   :  { %v390_v25 = vpop.permute.xlu1 %389  ;;  %v438_v35 = vsel %vm290_vm0, %v413_v29, %v409_v30 }
 0x2f0   :  { %v417_v31 = vrot.slane %v390_v25, %v912_v60 }
 0x2f2   :  { %v439_v41 = vsel %vm292_vm1, %v417_v31, %v438_v35 }
 0x2f3   :  { %v393_v26 = vpop.permute.xlu1 %392 }
 0x2f4   :  { %v421_v32 = vrot.slane %v393_v26, %v912_v60 }
 0x2f6   :  { %v440_v43 = vsel %vm294_vm2, %v421_v32, %v439_v41 }
 0x2f7   :  { %v396_v27 = vpop.permute.xlu1 %395 }
 0x2f8   :  { %v425_v33 = vrot.slane %v396_v27, %v912_v60 }
 0x2fa   :  { %v441_v45 = vsel %vm296_vm3, %v425_v33, %v440_v43 }
 0x2fb   :  { %v399_v28 = vpop.permute.xlu1 %398 }
 0x2fc   :  { %v429_v40 = vrot.slane %v399_v28, %v912_v60 }
 0x2fe   :  { %v442_v47 = vsel %vm298_vm4, %v429_v40, %v441_v45 }
 0x2ff   :  { %v402_v34 = vpop.permute.xlu1 %401 }
 0x300   :  { %v433_v42 = vrot.slane %v402_v34, %v912_v60 }
 0x302   :  { %v443_v49 = vsel %vm300_vm5, %v433_v42, %v442_v47 }
 0x303   :  { %v405_v46 = vpop.permute.xlu1 %404 }
 0x304   :  { %v437_v48 = vrot.slane %v405_v46, %v912_v60 }
 0x306   :  { %v444_v50 = vsel %vm302_vm6, %v437_v48, %v443_v49 }
 0x307   :  { %v446_v52 = vsel %vm305_vm7, %v444_v50, 0.0 }
 0x308   :  { %447 = vadd.xlane.f32.xlu1 %v446_v52 }
 0x395   :  { %v448_v53 = vpop.xlane.xlu1 %447 }
 0x396   :  { %740 = vrcp.f32 %v448_v53 }
 0x3a0   :  { %v741_v54 = vpop.eup %740 }
 0x3a1   :  { %v454_v57 = vrot.slane %v741_v54, %v312_v36  ;;  %v458_v59 = vrot.slane %v741_v54, %v316_v37  ;;  %v462_v60 = vrot.slane %v741_v54, %v320_v38  ;;  %v466_v0 = vrot.slane %v741_v54, %v324_v39 }
 0x3a2   :  { %v470_v6 = vrot.slane %v741_v54, %v328_v44  ;;  %v474_v37 = vrot.slane %v741_v54, %v332_v51  ;;  %v478_v38 = vrot.slane %v741_v54, %v336_v55  ;;  %v482_v39 = vrot.slane %v741_v54, %v340_v61 }
 0x3a3   :  { %v491_v58 = vmul.f32 %v725_v1, %v454_v57  ;;  %v492_v62 = vmul.f32 %v727_v2, %v458_v59  ;;  %v493_v63 = vmul.f32 %v729_v10, %v462_v60  ;;  %v494_v3 = vmul.f32 %v731_v13, %v466_v0 }
 0x3a4   :  { %v495_v36 = vmul.f32 %v733_v19, %v470_v6  ;;  %v496_v1 = vmul.f32 %v735_v20, %v474_v37  ;;  %v497_v2 = vmul.f32 %v737_v21, %v478_v38  ;;  %v498_v9 = vmul.f32 %v739_v22, %v482_v39 }
 0x3a5   :  { %501 = vperm.xlu0 %699, %v491_v58  }
 0x3a9   :  { %506 = vperm.xlu0 %699, %v492_v62  }
 0x3ad   :  { %511 = vperm.xlu0 %699, %v493_v63  }
 0x3b1   :  { %516 = vperm.xlu0 %699, %v494_v3  }
 0x3b5   :  { %521 = vperm.xlu0 %699, %v495_v36  }
 0x3b9   :  { %526 = vperm.xlu0 %699, %v496_v1  }
 0x3bd   :  { %531 = vperm.xlu0 %699, %v497_v2  }
 0x3c1   :  { %536 = vperm.xlu0 %699, %v498_v9  }
 0x424   :  { %v502_v10 = vpop.permute.xlu0 %501 }
 0x425   :  { %v539_v13 = vmul.f32 %v502_v10, %v876_v4 }
 0x427   :  { %v547_v21 = vrot.slane %v539_v13, 4 }
 0x428   :  { %v507_v44 = vpop.permute.xlu0 %506 }
 0x429   :  { %v540_v12 = vmul.f32 %v507_v44, %v878_v5  ;;  %v548_v26 = vadd.f32 %v547_v21, %v539_v13 }
 0x42b   :  { %v553_v19 = vrot.slane %v540_v12, 4  ;;  %v549_v30 = vrot.slane %v548_v26, 2 }
 0x42c   :  { %v512_v11 = vpop.permute.xlu0 %511 }
 0x42d   :  { %v541_v51 = vmul.f32 %v512_v11, %v888_v14  ;;  %v554_v23 = vadd.f32 %v553_v19, %v540_v12  ;;  %v550_v41 = vadd.f32 %v549_v30, %v548_v26 }
 0x42f   :  { %v559_v20 = vrot.slane %v541_v51, 4  ;;  %v555_v28 = vrot.slane %v554_v23, 2  ;;  %v551_v53 = vrot.slane %v550_v41, 1 }
 0x430   :  { %v517_v18 = vpop.permute.xlu0 %516 }
 0x431   :  { %v542_v55 = vmul.f32 %v517_v18, %v890_v15  ;;  %v560_v25 = vadd.f32 %v559_v20, %v541_v51  ;;  %v556_v34 = vadd.f32 %v555_v28, %v554_v23  ;;  %v552_v3 = vadd.f32 %v551_v53, %v550_v41 }
 0x433   :  { %v565_v56 = vrot.slane %v542_v55, 4  ;;  %v561_v29 = vrot.slane %v560_v25, 2  ;;  %v557_v48 = vrot.slane %v556_v34, 1 }
 0x434   :  { %v522_v61 = vpop.permute.xlu0 %521 }
 0x435   :  { %v543_v22 = vmul.f32 %v522_v61, %v882_v7  ;;  %v566_v27 = vadd.f32 %v565_v56, %v542_v55  ;;  %v562_v7 = vadd.f32 %v561_v29, %v560_v25  ;;  %v558_v62 = vadd.f32 %v557_v48, %v556_v34 }
 0x437   :  { %v571_v24 = vrot.slane %v543_v22, 4  ;;  %v567_v31 = vrot.slane %v566_v27, 2  ;;  %v563_v52 = vrot.slane %v562_v7, 1  ;;  %v603_v38 = vsel %vm290_vm0, %v558_v62, %v552_v3 }
 0x438   :  { %v527_v5 = vpop.permute.xlu0 %526 }
 0x439   :  { %v572_v14 = vadd.f32 %v571_v24, %v543_v22  ;;  %v544_v4 = vmul.f32 %v527_v5, %v884_v8  ;;  %v568_v42 = vadd.f32 %v567_v31, %v566_v27  ;;  %v564_v0 = vadd.f32 %v563_v52, %v562_v7 }
 0x43b   :  { %v577_v15 = vrot.slane %v544_v4, 4  ;;  %v573_v32 = vrot.slane %v572_v14, 2  ;;  %v569_v54 = vrot.slane %v568_v42, 1  ;;  %v604_v39 = vsel %vm292_vm1, %v564_v0, %v603_v38 }
 0x43c   :  { %v532_v33 = vpop.permute.xlu0 %531 }
 0x43d   :  { %v578_v35 = vadd.f32 %v577_v15, %v544_v4  ;;  %v545_v40 = vmul.f32 %v532_v33, %v892_v16  ;;  %v574_v46 = vadd.f32 %v573_v32, %v572_v14  ;;  %v570_v6 = vadd.f32 %v569_v54, %v568_v42 }
 0x43f   :  { %v579_v43 = vrot.slane %v578_v35, 2  ;;  %v583_v45 = vrot.slane %v545_v40, 4  ;;  %v575_v59 = vrot.slane %v574_v46, 1  ;;  %v605_v10 = vsel %vm294_vm2, %v570_v6, %v604_v39 }
 0x440   :  { %v537_v47 = vpop.permute.xlu0 %536 }
 0x441   :  { %v580_v49 = vadd.f32 %v579_v43, %v578_v35  ;;  %v584_v8 = vadd.f32 %v583_v45, %v545_v40  ;;  %v546_v50 = vmul.f32 %v537_v47, %v894_v17  ;;  %v576_v1 = vadd.f32 %v575_v59, %v574_v46 }
 0x443   :  { %v585_v57 = vrot.slane %v584_v8, 2  ;;  %v589_v58 = vrot.slane %v546_v50, 4  ;;  %v581_v16 = vrot.slane %v580_v49, 1  ;;  %v606_v11 = vsel %vm296_vm3, %v576_v1, %v605_v10 }
 0x445   :  { %v586_v60 = vadd.f32 %v585_v57, %v584_v8  ;;  %v590_v63 = vadd.f32 %v589_v58, %v546_v50  ;;  %v582_v2 = vadd.f32 %v581_v16, %v580_v49 }
 0x447   :  { %v587_v36 = vrot.slane %v586_v60, 1  ;;  %v591_v37 = vrot.slane %v590_v63, 2  ;;  %v607_v51 = vsel %vm298_vm4, %v582_v2, %v606_v11 }
 0x449   :  { %v592_v17 = vadd.f32 %v591_v37, %v590_v63  ;;  %v588_v9 = vadd.f32 %v587_v36, %v586_v60 }
 0x44b   :  { %v593_v44 = vrot.slane %v592_v17, 1  ;;  %v608_v13 = vsel %vm300_vm5, %v588_v9, %v607_v51 }
 0x44d   :  { %v594_v12 = vadd.f32 %v593_v44, %v592_v17 }
 0x44f   :  { %v609_v18 = vsel %vm302_vm6, %v594_v12, %v608_v13 }
 0x450   :  { %611 = vst [vmem:[#allocation8] sm:$0xff] %v609_v18 }
 0x451   :  { %797 = shalt.err (!%p794_p6)
}
 0x452   :  { %s798_s27 = scalar_lea.hbm %s1026_s5, 128 }
 0x453   :  { %p799_p7 = scmp.ne.s32.totalorder %s1026_s5, %s798_s27  ;;  %p802_p8 = scmp.lt.u32.totalorder %s798_s27, %s1026_s5 }
 0x455   :  { %p804_p9 = pnand %p802_p8, %p799_p7 }
 0x457   :  { %807 = shalt.err (!%p804_p9)
}
 0x458   :  { %621 = dma.vmem_to_hbm [thread:$0]  %s619_s23, 128, %s1026_s5, [#allocation5]  }
 0x459   :  { %812 = dma.done.wait [#allocation5], 128  }
 0x45a   :  { %813 = vsyncadd [#allocation5], 4294967168 }
 0x45b   :  { %625 = vsyncpa [#allocation4], 1 }
 0x45c   :  { %626 = vsyncpa [#allocation7], 1 }
 0x45d   :  { %627 = vsyncpa [#allocation5], 1 }

</bundles_post_ra>
